<compile_context>
chip_gen: v7x
topology: tpu7x:2x2x1
jax: 0.10.0
libtpu: 0.0.40
codegen_flags: <defaults>
</compile_context>

<pallas_src>
import functools
import math

import jax
import jax.numpy as jnp
import numpy as np
from jax import lax
from jax.experimental import pallas as pl
from jax.experimental.pallas import tpu as pltpu


def _round_up(x, m):
    return ((x + m - 1) // m) * m


# ----------------------------------------------------------------------------
# Fused kernel: per-(batch, N-tile) assignment (matmul + folded-BN shift +
# softmax) -> VLAD accumulation; finalize: c2 subtraction, intra-norm,
# global L2 norm, lane-dense store.
# ----------------------------------------------------------------------------
def _netvlad_kernel(x_ref, c_ref, shift_ref, c2_ref, out_ref,
                    acc_vlad, acc_asum, *,
                    cluster_size, n_total, tile_n, needs_mask):
    n_idx = pl.program_id(1)

    @pl.when(n_idx == 0)
    def _init():
        acc_vlad[...] = jnp.zeros_like(acc_vlad)
        acc_asum[...] = jnp.zeros_like(acc_asum)

    xb = x_ref[...]                                     # (TN, D) f32 tile
    if needs_mask:
        # Last N tile may run past N: zero out padded rows before they touch
        # either matmul or the a_sum reduce.
        row = lax.broadcasted_iota(jnp.int32, (tile_n, 1), 0)
        valid = (n_idx * tile_n + row) < n_total
        xb = jnp.where(valid, xb, 0.0)

    xb16 = xb.astype(jnp.bfloat16)                      # bf16 MXU operand

    # Assignment logits: eval-mode BN already folded into c_ref / shift_ref.
    s = jnp.dot(xb16, c_ref[...], preferred_element_type=jnp.float32)
    s = s + shift_ref[...]                              # (TN, KGp) f32

    # Softmax over real + ghost clusters; padded lanes carry a -1e30 shift so
    # exp underflows to exactly 0 and the denominator is unaffected.
    m = jnp.max(s, axis=-1, keepdims=True)
    e = jnp.exp(s - m)
    denom = jnp.sum(e, axis=-1, keepdims=True)
    p = e * pl.reciprocal(denom, approx=True)           # EUP, not VPU divide
    if needs_mask:
        p = jnp.where(valid, p, 0.0)

    # vlad[k, d] += sum_n p[n, k] * x[n, d], on the full padded cluster axis
    # (same MXU pass count as the [:K] slice; rows >= K are dropped later).
    dims = (((0,), (0,)), ((), ()))                     # contract over N, no .T
    acc_vlad[...] += lax.dot_general(p.astype(jnp.bfloat16), xb16,
                                     dimension_numbers=dims,
                                     preferred_element_type=jnp.float32)
    # a_sum[k] += sum_n p[n, k]  — VPU/XLU sublane reduce, no extra MXU pass.
    acc_asum[...] += jnp.sum(p, axis=0, keepdims=True)  # (1, KGp) f32

    @pl.when(n_idx == pl.num_programs(1) - 1)
    def _finalize():
        K = cluster_size
        vlad = acc_vlad[pl.ds(0, K), :]                 # (K, D) real clusters
        # (1, KGp) -> (KGp, 1) XLU transpose, then keep the K real clusters.
        a_sum = jnp.transpose(acc_asum[...])[:K]        # (K, 1)
        vlad = vlad - a_sum * c2_ref[...]               # c2 stored as (K, D)

        # F.normalize over dim=1 of (B, D, K) == per-cluster norm over D (rows).
        row_ss = jnp.sum(vlad * vlad, axis=-1, keepdims=True)
        vlad = vlad * lax.rsqrt(jnp.maximum(row_ss, 1e-24))

        # F.normalize of the flattened vector: each normalized row contributes
        # exactly min(row_ss * 1e24, 1) to the squared norm (1 unless the row
        # was degenerate), so no second full-tile reduction is needed.
        tot_ss = jnp.sum(jnp.minimum(row_ss * 1e24, 1.0), keepdims=True)
        vlad = vlad * lax.rsqrt(jnp.maximum(tot_ss, 1e-24))

        out_ref[...] = vlad                             # (K, D) lane-dense store


@functools.partial(jax.jit, static_argnames=("cluster_size", "tile_n"))
def netvlad_forward(x, clusters, clusters2, bn_w, bn_b, bn_mean, bn_var, *,
                    cluster_size, tile_n=1024):
    B, N, D = x.shape
    KG = clusters.shape[1]
    K = cluster_size

    # Fold eval-mode BatchNorm (running stats) into the assignment matmul.
    scale = bn_w / jnp.sqrt(bn_var + 1e-5)              # (KG,)
    shift = bn_b - bn_mean * scale                      # (KG,)
    c_folded = clusters * scale[None, :]                # (D, KG)

    # Pad the cluster axis to full 128-lane width.  Padded columns have zero
    # weight and a -1e30 shift -> exp() == 0 -> softmax unaffected.
    KGp = _round_up(KG, 128)
    c_pad = (jnp.zeros((D, KGp), jnp.float32).at[:, :KG].set(c_folded)
             .astype(jnp.bfloat16))                     # bf16 MXU operand
    shift_pad = jnp.full((1, KGp), -1e30, jnp.float32).at[:, :KG].set(
        shift[None, :])

    # clusters2 stored PyTorch-style as (1, D, K); kernel wants (K, D).
    c2_t = jnp.swapaxes(clusters2[0], 0, 1)             # (K, D) f32

    # N tiling: TN ~ 1024 keeps x double-buffer + softmax temporaries well
    # under v7x's 64 MiB VMEM (and v5e's scoped default) at D=512.
    TN = N if N <= tile_n else tile_n
    num_n = (N + TN - 1) // TN
    needs_mask = (N % TN) != 0

    kernel = functools.partial(_netvlad_kernel, cluster_size=K, n_total=N,
                               tile_n=TN, needs_mask=needs_mask)

    vlad_bkd = pl.pallas_call(
        kernel,
        out_shape=jax.ShapeDtypeStruct((B, K, D), jnp.float32),
        grid_spec=pltpu.PrefetchScalarGridSpec(
            num_scalar_prefetch=0,
            grid=(B, num_n),
            in_specs=[
                pl.BlockSpec((None, TN, D), lambda b, n: (b, n, 0)),  # x tile
                pl.BlockSpec((D, KGp), lambda b, n: (0, 0)),   # folded clusters
                pl.BlockSpec((1, KGp), lambda b, n: (0, 0)),   # folded BN shift
                pl.BlockSpec((K, D), lambda b, n: (0, 0)),     # clusters2^T
            ],
            out_specs=pl.BlockSpec((None, K, D), lambda b, n: (b, 0, 0)),
            scratch_shapes=[
                pltpu.VMEM((KGp, D), jnp.float32),      # VLAD accumulator
                pltpu.VMEM((1, KGp), jnp.float32),      # a_sum accumulator
            ],
        ),
        compiler_params=pltpu.CompilerParams(
            dimension_semantics=("parallel", "arbitrary"),
            vmem_limit_bytes=48 * 1024 * 1024,          # fits v7x's 64 MiB VMEM
        ),
    )(x, c_pad, shift_pad, c2_t)

    # (B, K, D) -> (B, D, K) -> (B, D*K): PyTorch output ordering; kept outside
    # the kernel so the in-kernel store stays lane-dense (D lanes, not K).
    return jnp.swapaxes(vlad_bkd, 1, 2).reshape(B, D * K)


# ----------------------------------------------------------------------------
# Module-equivalent wrapper
# ----------------------------------------------------------------------------
class NetVLADPallas:
    def __init__(self, cluster_size, feature_size, ghost_clusters, key):
        self.cluster_size = cluster_size
        self.feature_size = feature_size
        self.ghost_clusters = ghost_clusters
        clusters_total = cluster_size + ghost_clusters
        init_sc = 1.0 / math.sqrt(feature_size)

        k1, k2 = jax.random.split(key)
        self.clusters = (init_sc *
                         jax.random.normal(k1, (feature_size, clusters_total),
                                           dtype=jnp.float32))
        # clusters2 kept in the PyTorch layout (1, D, K)
        self.clusters2 = (init_sc *
                          jax.random.normal(k2, (1, feature_size, cluster_size),
                                            dtype=jnp.float32))
        # BatchNorm1d buffers/params (weight=1, bias=0, fresh running stats),
        # applied with running stats exactly like the reference CUDA kernel.
        self.bn_weight = jnp.ones((clusters_total,), jnp.float32)
        self.bn_bias = jnp.zeros((clusters_total,), jnp.float32)
        self.bn_mean = jnp.zeros((clusters_total,), jnp.float32)
        self.bn_var = jnp.ones((clusters_total,), jnp.float32)

    def __call__(self, x, tile_n=1024):
        assert x.shape[-1] == self.feature_size
        return netvlad_forward(
            x, self.clusters, self.clusters2,
            self.bn_weight, self.bn_bias, self.bn_mean, self.bn_var,
            cluster_size=self.cluster_size, tile_n=tile_n)


# pure-JAX (f32) reference for a correctness sanity check
def _reference(model, x):
    B, N, D = x.shape
    x_flat = x.reshape(-1, D)
    s = x_flat @ model.clusters
    s = ((s - model.bn_mean) / jnp.sqrt(model.bn_var + 1e-5)
         * model.bn_weight + model.bn_bias)
    p = jax.nn.softmax(s, axis=-1)[:, :model.cluster_size].reshape(B, N, -1)
    a_sum = jnp.sum(p, axis=1, keepdims=True)                 # (B, 1, K)
    a = a_sum * model.clusters2                               # (B, D, K)
    vlad = jnp.einsum('bnk,bnd->bdk', p, x) - a
    vlad = vlad / jnp.maximum(
        jnp.linalg.norm(vlad, axis=1, keepdims=True), 1e-12)
    vlad = vlad.reshape(B, -1)
    vlad = vlad / jnp.maximum(
        jnp.linalg.norm(vlad, axis=1, keepdims=True), 1e-12)
    return vlad


if __name__ == "__main__":
    key = jax.random.PRNGKey(0)
    k_param, k_x1, k_x2 = jax.random.split(key, 3)

    B, D = 2, 32
    cluster_size, ghost_clusters = 16, 4
    model = NetVLADPallas(cluster_size, D, ghost_clusters, k_param)

    # Test 1: small shapes, single N tile per batch.
    x = jax.random.normal(k_x1, (B, 8, D), dtype=jnp.float32)
    out = jax.block_until_ready(model(x))
    ref = _reference(model, x)
    # bf16 MXU operands + approx reciprocal -> loosened tolerance vs f32 ref.
    np.testing.assert_allclose(np.asarray(out), np.asarray(ref),
                               rtol=5e-2, atol=5e-3)
    assert out.shape == (B, cluster_size * D)

    # Test 2: exercises the N-tiled accumulator and the remainder-mask path
    # (N=40 with TN=16 -> 3 tiles, last one partially padded).
    x2 = jax.random.normal(k_x2, (B, 40, D), dtype=jnp.float32)
    out2 = jax.block_until_ready(model(x2, tile_n=16))
    ref2 = _reference(model, x2)
    np.testing.assert_allclose(np.asarray(out2), np.asarray(ref2),
                               rtol=5e-2, atol=5e-3)
    assert out2.shape == (B, cluster_size * D)

    print("KERNEL_OK")
</pallas_src>

<mosaic_0001>
module attributes {stable_mosaic.version = 11 : i64} {
  func.func @_netvlad_kernel(%arg0: i32, %arg1: i32, %arg2: memref<1x8x32xf32, #tpu.memory_space<vmem>>, %arg3: memref<32x128xbf16, #tpu.memory_space<vmem>>, %arg4: memref<1x128xf32, #tpu.memory_space<vmem>>, %arg5: memref<16x32xf32, #tpu.memory_space<vmem>>, %arg6: memref<1x16x32xf32, #tpu.memory_space<vmem>>, %arg7: memref<128x32xf32, #tpu.memory_space<vmem>>, %arg8: memref<1x128xf32, #tpu.memory_space<vmem>>) attributes {dimension_semantics = [#tpu.dimension_semantics<parallel>, #tpu.dimension_semantics<arbitrary>], iteration_bounds = array<i64: 2, 1>, scalar_prefetch = 0 : i64, scratch_operands = 2 : i64, tpu.core_type = #tpu.core_type<tc>, window_params = [{transform_indices = @transform_0, window_bounds = array<i64: 1, 8, 32>}, {pipeline_mode = #tpu.pipeline_mode<synchronous>, transform_indices = @transform_1, window_bounds = array<i64: 32, 128>}, {pipeline_mode = #tpu.pipeline_mode<synchronous>, transform_indices = @transform_2, window_bounds = array<i64: 1, 128>}, {pipeline_mode = #tpu.pipeline_mode<synchronous>, transform_indices = @transform_3, window_bounds = array<i64: 16, 32>}, {transform_indices = @transform_4, window_bounds = array<i64: 1, 16, 32>}]} {
    %c0_i32 = arith.constant 0 : i32
    %0 = arith.cmpi eq, %arg1, %c0_i32 : i32
    %1 = arith.extui %0 : i1 to i32
    %c0_i32_0 = arith.constant 0 : i32
    %2 = arith.cmpi ne, %1, %c0_i32_0 : i32
    scf.if %2 {
      %cst_21 = arith.constant 0.000000e+00 : f32
      %34 = vector.broadcast %cst_21 : f32 to vector<128x32xf32>
      %c0_22 = arith.constant 0 : index
      %c0_23 = arith.constant 0 : index
      %35 = vector.load %arg7[%c0_22, %c0_23] : memref<128x32xf32, #tpu.memory_space<vmem>>, vector<128x32xf32>
      tpu.vector_store %arg7[%c0_22, %c0_23], %34 {strides = array<i32>} : memref<128x32xf32, #tpu.memory_space<vmem>>, vector<128x32xf32>,
      %cst_24 = arith.constant 0.000000e+00 : f32
      %36 = vector.broadcast %cst_24 : f32 to vector<1x128xf32>
      %c0_25 = arith.constant 0 : index
      %c0_26 = arith.constant 0 : index
      %37 = vector.load %arg8[%c0_25, %c0_26] : memref<1x128xf32, #tpu.memory_space<vmem>>, vector<1x128xf32>
      tpu.vector_store %arg8[%c0_25, %c0_26], %36 {strides = array<i32>} : memref<1x128xf32, #tpu.memory_space<vmem>>, vector<1x128xf32>,
    } else {
    }
    %c0 = arith.constant 0 : index
    %c0_1 = arith.constant 0 : index
    %c0_2 = arith.constant 0 : index
    %3 = vector.load %arg2[%c0, %c0_1, %c0_2] : memref<1x8x32xf32, #tpu.memory_space<vmem>>, vector<1x8x32xf32>
    %4 = vector.shape_cast %3 : vector<1x8x32xf32> to vector<8x32xf32>
    %5 = arith.truncf %4 : vector<8x32xf32> to vector<8x32xbf16>
    %c0_3 = arith.constant 0 : index
    %c0_4 = arith.constant 0 : index
    %6 = vector.load %arg3[%c0_3, %c0_4] : memref<32x128xbf16, #tpu.memory_space<vmem>>, vector<32x128xbf16>
    %cst = arith.constant dense<0.000000e+00> : vector<8x128xf32>
    %7 = tpu.matmul %5, %6, %cst {dimension_numbers = #tpu.dot_dimension_numbers<[1], [0], [0], [1], [0, 0, 1, 1], [], []>} : vector<8x32xbf16>, vector<32x128xbf16>, vector<8x128xf32> -> vector<8x128xf32>
    %c0_5 = arith.constant 0 : index
    %c0_6 = arith.constant 0 : index
    %8 = vector.load %arg4[%c0_5, %c0_6] : memref<1x128xf32, #tpu.memory_space<vmem>>, vector<1x128xf32>
    %9 = vector.broadcast %8 : vector<1x128xf32> to vector<8x128xf32>
    %10 = arith.addf %7, %9 : vector<8x128xf32>
    %cst_7 = arith.constant dense<0xFF800000> : vector<8xf32>
    %11 = vector.multi_reduction <maximumf>, %10, %cst_7 [1] : vector<8x128xf32> to vector<8xf32>
    %12 = vector.shape_cast %11 : vector<8xf32> to vector<8x1xf32>
    %13 = vector.broadcast %12 : vector<8x1xf32> to vector<8x128xf32>
    %14 = arith.subf %10, %13 : vector<8x128xf32>
    %15 = math.exp %14 : vector<8x128xf32>
    %cst_8 = arith.constant dense<0.000000e+00> : vector<8xf32>
    %16 = vector.multi_reduction <add>, %15, %cst_8 [1] : vector<8x128xf32> to vector<8xf32>
    %17 = vector.shape_cast %16 : vector<8xf32> to vector<8x1xf32>
    %18 = tpu.reciprocal %17 {approx = true} : vector<8x1xf32> -> vector<8x1xf32>
    %19 = vector.broadcast %18 : vector<8x1xf32> to vector<8x128xf32>
    %20 = arith.mulf %15, %19 : vector<8x128xf32>
    %c0_9 = arith.constant 0 : index
    %c0_10 = arith.constant 0 : index
    %21 = vector.load %arg7[%c0_9, %c0_10] : memref<128x32xf32, #tpu.memory_space<vmem>>, vector<128x32xf32>
    %22 = arith.truncf %20 : vector<8x128xf32> to vector<8x128xbf16>
    %cst_11 = arith.constant dense<0.000000e+00> : vector<128x32xf32>
    %23 = tpu.matmul %22, %5, %cst_11 {dimension_numbers = #tpu.dot_dimension_numbers<[0], [0], [1], [1], [0, 1, 1, 1], [], []>} : vector<8x128xbf16>, vector<8x32xbf16>, vector<128x32xf32> -> vector<128x32xf32>
    %24 = arith.addf %21, %23 : vector<128x32xf32>
    %c0_12 = arith.constant 0 : index
    %c0_13 = arith.constant 0 : index
    %25 = vector.load %arg7[%c0_12, %c0_13] : memref<128x32xf32, #tpu.memory_space<vmem>>, vector<128x32xf32>
    tpu.vector_store %arg7[%c0_12, %c0_13], %24 {strides = array<i32>} : memref<128x32xf32, #tpu.memory_space<vmem>>, vector<128x32xf32>,
    %c0_14 = arith.constant 0 : index
    %c0_15 = arith.constant 0 : index
    %26 = vector.load %arg8[%c0_14, %c0_15] : memref<1x128xf32, #tpu.memory_space<vmem>>, vector<1x128xf32>
    %cst_16 = arith.constant dense<0.000000e+00> : vector<128xf32>
    %27 = vector.multi_reduction <add>, %20, %cst_16 [0] : vector<8x128xf32> to vector<128xf32>
    %28 = vector.shape_cast %27 : vector<128xf32> to vector<1x128xf32>
    %29 = arith.addf %26, %28 : vector<1x128xf32>
    %c0_17 = arith.constant 0 : index
    %c0_18 = arith.constant 0 : index
    %30 = vector.load %arg8[%c0_17, %c0_18] : memref<1x128xf32, #tpu.memory_space<vmem>>, vector<1x128xf32>
    tpu.vector_store %arg8[%c0_17, %c0_18], %29 {strides = array<i32>} : memref<1x128xf32, #tpu.memory_space<vmem>>, vector<1x128xf32>,
    %c0_i32_19 = arith.constant 0 : i32
    %31 = arith.cmpi eq, %arg1, %c0_i32_19 : i32
    %32 = arith.extui %31 : i1 to i32
    %c0_i32_20 = arith.constant 0 : i32
    %33 = arith.cmpi ne, %32, %c0_i32_20 : i32
    scf.if %33 {
      %c0_21 = arith.constant 0 : index
      %c0_22 = arith.constant 0 : index
      %34 = vector.load %arg7[%c0_21, %c0_22] : memref<128x32xf32, #tpu.memory_space<vmem>>, vector<16x32xf32>
      %c0_23 = arith.constant 0 : index
      %c0_24 = arith.constant 0 : index
      %35 = vector.load %arg8[%c0_23, %c0_24] : memref<1x128xf32, #tpu.memory_space<vmem>>, vector<1x128xf32>
      %36 = tpu.transpose %35, [1, 0] : vector<1x128xf32> -> vector<128x1xf32>
      %37 = vector.extract_strided_slice %36 {offsets = [0, 0], sizes = [16, 1], strides = [1, 1]} : vector<128x1xf32> to vector<16x1xf32>
      %c0_25 = arith.constant 0 : index
      %c0_26 = arith.constant 0 : index
      %38 = vector.load %arg5[%c0_25, %c0_26] : memref<16x32xf32, #tpu.memory_space<vmem>>, vector<16x32xf32>
      %39 = vector.broadcast %37 : vector<16x1xf32> to vector<16x32xf32>
      %40 = arith.mulf %39, %38 : vector<16x32xf32>
      %41 = arith.subf %34, %40 : vector<16x32xf32>
      %42 = arith.mulf %41, %41 : vector<16x32xf32>
      %cst_27 = arith.constant dense<0.000000e+00> : vector<16xf32>
      %43 = vector.multi_reduction <add>, %42, %cst_27 [1] : vector<16x32xf32> to vector<16xf32>
      %44 = vector.shape_cast %43 : vector<16xf32> to vector<16x1xf32>
      %cst_28 = arith.constant 1.000000e-24 : f32
      %45 = vector.broadcast %cst_28 : f32 to vector<16x1xf32>
      %46 = arith.maximumf %44, %45 : vector<16x1xf32>
      %47 = math.rsqrt %46 : vector<16x1xf32>
      %48 = vector.broadcast %47 : vector<16x1xf32> to vector<16x32xf32>
      %49 = arith.mulf %41, %48 : vector<16x32xf32>
      %cst_29 = arith.constant 1.000000e+24 : f32
      %50 = vector.broadcast %cst_29 : f32 to vector<16x1xf32>
      %51 = arith.mulf %44, %50 : vector<16x1xf32>
      %cst_30 = arith.constant 1.000000e+00 : f32
      %52 = vector.broadcast %cst_30 : f32 to vector<16x1xf32>
      %53 = arith.minimumf %51, %52 : vector<16x1xf32>
      %54 = vector.shape_cast %53 : vector<16x1xf32> to vector<1x16x1xf32>
      %cst_31 = arith.constant dense<0.000000e+00> : vector<1xf32>
      %55 = vector.multi_reduction <add>, %54, %cst_31 [1, 2] : vector<1x16x1xf32> to vector<1xf32>
      %56 = vector.shape_cast %55 : vector<1xf32> to vector<1x1x1xf32>
      %57 = vector.extract %56[0, 0, 0] : f32 from vector<1x1x1xf32>
      %58 = vector.broadcast %57 : f32 to vector<1x1xf32>
      %cst_32 = arith.constant 1.000000e-24 : f32
      %59 = vector.broadcast %cst_32 : f32 to vector<1x1xf32>
      %60 = arith.maximumf %58, %59 : vector<1x1xf32>
      %61 = math.rsqrt %60 : vector<1x1xf32>
      %62 = vector.broadcast %61 : vector<1x1xf32> to vector<16x32xf32>
      %63 = arith.mulf %49, %62 : vector<16x32xf32>
      %c0_33 = arith.constant 0 : index
      %c0_34 = arith.constant 0 : index
      %c0_35 = arith.constant 0 : index
      %64 = vector.load %arg6[%c0_33, %c0_34, %c0_35] : memref<1x16x32xf32, #tpu.memory_space<vmem>>, vector<1x16x32xf32>
      %65 = vector.shape_cast %64 : vector<1x16x32xf32> to vector<16x32xf32>
      %66 = vector.shape_cast %63 : vector<16x32xf32> to vector<1x16x32xf32>
      tpu.vector_store %arg6[%c0_33, %c0_34, %c0_35], %66 {strides = array<i32>} : memref<1x16x32xf32, #tpu.memory_space<vmem>>, vector<1x16x32xf32>,
    } else {
    }
    return
  }
  func.func @transform_0(%arg0: i32, %arg1: i32) -> (i32, i32, i32) {
    %c0_i32 = arith.constant 0 : i32
    %c0_i32_0 = arith.constant 0 : i32
    return %arg0, %arg1, %c0_i32 : i32, i32, i32
  }
  func.func @transform_1(%arg0: i32, %arg1: i32) -> (i32, i32) {
    %c0_i32 = arith.constant 0 : i32
    %c0_i32_0 = arith.constant 0 : i32
    %c0_i32_1 = arith.constant 0 : i32
    return %c0_i32, %c0_i32_0 : i32, i32
  }
  func.func @transform_2(%arg0: i32, %arg1: i32) -> (i32, i32) {
    %c0_i32 = arith.constant 0 : i32
    %c0_i32_0 = arith.constant 0 : i32
    %c0_i32_1 = arith.constant 0 : i32
    return %c0_i32, %c0_i32_0 : i32, i32
  }
  func.func @transform_3(%arg0: i32, %arg1: i32) -> (i32, i32) {
    %c0_i32 = arith.constant 0 : i32
    %c0_i32_0 = arith.constant 0 : i32
    %c0_i32_1 = arith.constant 0 : i32
    return %c0_i32, %c0_i32_0 : i32, i32
  }
  func.func @transform_4(%arg0: i32, %arg1: i32) -> (i32, i32, i32) {
    %c0_i32 = arith.constant 0 : i32
    %c0_i32_0 = arith.constant 0 : i32
    %c0_i32_1 = arith.constant 0 : i32
    return %arg0, %c0_i32, %c0_i32_0 : i32, i32, i32
  }
}

</mosaic_0001>

<bundles_post_ra>
// kernel: netvlad_forward.1
= control target key start
LH: loop header
LB: loop body
LE: loop exit
PB: predicated region body
PF: predicated region fallthrough
CT: control target
= control target key end

     0   :  { %s836_s15 = smov 0   ;;  %s838_s16 = smov 0   ;;  %s949_s0 = inlined_call_operand.vmem [shape: f32[2,8,32], index: 0, kind: input, shape index: {}]   ;;  %s950_s1 = inlined_call_operand.vmem [shape: bf16[32,128], index: 1, kind: input, shape index: {}]   ;;  %s951_s2 = inlined_call_operand.vmem [shape: f32[1,128], index: 2, kind: input, shape index: {}]   ;;  %s952_s3 = inlined_call_operand.vmem [shape: f32[16,32], index: 3, kind: input, shape index: {}]   ;;  %s953_s4 = inlined_call_operand.vmem [shape: f32[2,16,32], index: 4, kind: output, shape index: {}]  }
   0x1   :  { %s840_s17 = smov 0  }
   0x2 LB: > { %s26_s18 = sadd.s32 1, %s802_s16  ;;  %p680_p0 = scmp.ge.s32.totalorder %s806_s17, 1  ;;  %s806_s17 = sphi %s840_s17, %s14_s17   ;;  %s802_s16 = sphi %s838_s16, %s955_s16   ;;  %s798_s15 = sphi %s836_s15, %s954_s15  }
   0x3   : > { %p28_p1 = scmp.ge.s32.totalorder %s26_s18, 2  ;;  %p178_p2 = scmp.lt.s32.totalorder %s806_s17, 3 }
   0x5   : > { %s957_s18 = smov (%p28_p1, %s26_s18), 0  ;;  %p179_p3 = pnand %p680_p0, %p178_p2 }
   0x6   : > { %v772_v0 = vld [vmem:[%s950_s1] sm:$0xff] (!%p179_p3)   ;;  %v808_v1 = vmov (!%p179_p3), 0.0   ;;  %v773_v2 = vld [vmem:[%s950_s1 + $0x8] sm:$0xff] (!%p179_p3)   ;;  %vm809_vm0 = vmmov (!%p179_p3), 0   ;;  %p206_p4 = scmp.lt.s32.totalorder (!%p179_p3), %s798_s15, 1  ;;  %vm223_vm1 = vcmask (!%p179_p3), 261120  }
   0x7   : > { %182 = sbr.rel (%p179_p3) target bundleno = 1255 (0x4e7), region = 36  ;;  %711 = vmatprep.subr.bf16.mxu0 (!%p179_p3), %v808_v1  ;;  %240 = vst [vmem:[#allocation3] sm:$0x1] (!%p179_p3), %v808_v1  ;;  %715 = vmatprep.mubr.msk.bf16.mxu0 (!%p179_p3), %vm809_vm0, %v808_v1  ;;  %224 = vst.msk [vmem:[#allocation2] sm:$0xff] (!%p179_p3), %vm223_vm1, %v808_v1  ;;  %v684_v5 = vld [vmem:[%s951_s2] ss:$0 sm:$0xff] (!%p179_p3) }
   0x8   : > { %712 = vmatpush3.bf16.msra.mxu0 (!%p179_p3), %v772_v0  ;;  %225 = vst.msk [vmem:[#allocation2 + $0x8] sm:$0xff] (!%p179_p3), %vm223_vm1, %v808_v1  ;;  %226 = vst.msk [vmem:[#allocation2 + $0x10] sm:$0xff] (!%p179_p3), %vm223_vm1, %v808_v1  ;;  %vm377_vm2 = vcmask (!%p179_p3), 1043456   ;;  %v810_v24 = vmov (!%p179_p3), 0   ;;  %vm352_vm3 = vcmask (!%p179_p3), 64512   ;;  %v556_v53 = vld [vmem:[%s952_s3] sm:$0xff] (!%p179_p3) }
   0x9   : > { %713 = vmatprep.subr.bf16.mxu0 (!%p179_p3), %v808_v1  ;;  %227 = vst.msk [vmem:[#allocation2 + $0x18] sm:$0xff] (!%p179_p3), %vm223_vm1, %v808_v1  ;;  %228 = vst.msk [vmem:[#allocation2 + $0x20] sm:$0xff] (!%p179_p3), %vm223_vm1, %v808_v1  ;;  %770 = vset.pattern.permute.xlu0 (!%p179_p3), %v810_v24  ;;  %v557_v55 = vld [vmem:[%s952_s3 + $0x8] sm:$0xff] (!%p179_p3)  ;;  %vm590_vm4 = vcmask (!%p179_p3), 7168  }
   0xa   : > { %229 = vst.msk [vmem:[#allocation2 + $0x28] sm:$0xff] (!%p179_p3), %vm223_vm1, %v808_v1  ;;  %230 = vst.msk [vmem:[#allocation2 + $0x30] sm:$0xff] (!%p179_p3), %vm223_vm1, %v808_v1 }
   0xb   : > { %231 = vst.msk [vmem:[#allocation2 + $0x38] sm:$0xff] (!%p179_p3), %vm223_vm1, %v808_v1  ;;  %232 = vst.msk [vmem:[#allocation2 + $0x40] sm:$0xff] (!%p179_p3), %vm223_vm1, %v808_v1 }
   0xc   : > { %233 = vst.msk [vmem:[#allocation2 + $0x48] sm:$0xff] (!%p179_p3), %vm223_vm1, %v808_v1  ;;  %234 = vst.msk [vmem:[#allocation2 + $0x50] sm:$0xff] (!%p179_p3), %vm223_vm1, %v808_v1  ;;  %714 = vmatpush3.bf16.msra.mxu0 (!%p179_p3), %v773_v2 }
   0xd   : > { %235 = vst.msk [vmem:[#allocation2 + $0x58] sm:$0xff] (!%p179_p3), %vm223_vm1, %v808_v1  ;;  %236 = vst.msk [vmem:[#allocation2 + $0x60] sm:$0xff] (!%p179_p3), %vm223_vm1, %v808_v1 }
   0xe   : > { %237 = vst.msk [vmem:[#allocation2 + $0x68] sm:$0xff] %vm223_vm1, %v808_v1  ;;  %238 = vst.msk [vmem:[#allocation2 + $0x70] sm:$0xff] %vm223_vm1, %v808_v1  ;;  %s959_s15 = smov (!%p206_p4, %s798_s15), 1  ;;  %v509_v26 = vld [vmem:[#allocation3] sm:$0x1] }
   0xf   : > { %239 = vst.msk [vmem:[#allocation2 + $0x78] sm:$0xff] %vm223_vm1, %v808_v1  ;;  %s681_s23 = sshll.u32 %s959_s15, 3  ;;  %v321_v40 = vld [vmem:[#allocation2 + $0x10] sm:$0xff]  ;;  %v319_v41 = vld [vmem:[#allocation2] sm:$0xff]  ;;  %v320_v46 = vld [vmem:[#allocation2 + $0x8] sm:$0xff]  ;;  %s698_s8 = sshll.u32 %s959_s15, 4 }
  0x10   : > { %s212_s26 = scalar_lea.vmem %s949_s0, %s681_s23  ;;  %v322_v43 = vld [vmem:[#allocation2 + $0x18] sm:$0xff]  ;;  %v323_v57 = vld [vmem:[#allocation2 + $0x20] sm:$0xff]  ;;  %s217_s11 = scalar_lea.vmem %s953_s4, %s698_s8 }
  0x11   : > { %v241_v3 = vld [vmem:[%s212_s26] sm:$0xff]  ;;  %v325_v52 = vld [vmem:[#allocation2 + $0x30] sm:$0xff]  ;;  %v324_v62 = vld [vmem:[#allocation2 + $0x28] sm:$0xff] }
  0x12   : > { %v242_v4 = vpack.c.bf16 %v241_v3, %v241_v3  ;;  %v326_v59 = vld [vmem:[#allocation2 + $0x38] sm:$0xff] }
  0x14   : > { %716 = vmatmul.mubr.msk.bf16.vlgmr.msra.gmra.mrb[0].mxu0 %vm223_vm1, %v242_v4  ;;  %739 = vmatprep.subr.msk.bf16.mxu0 %vm377_vm2, %v242_v4  ;;  %v378_v15 = vsel %vm377_vm2, %v242_v4, 0 }
  0x15   : > { %740 = vmatprep.subr.msk.bf16.mxu1 %vm377_vm2, %v242_v4  ;;  %720 = vmatpush3.bf16.msra.mxu0 %v378_v15 }
  0x16   : > { %738 = vmatpush3.bf16.msra.mxu1 %v378_v15 }
  0xe7   : > { %v304_v6 = vpop.f32.mrb[0].mxu0 }
  0xe8   : > { %v305_v7 = vadd.f32 %v684_v5, %v304_v6  ;;  %v717_v8 = vpop.f32.mrb[1].mxu0 }
  0xe9   : > { %v307_v9 = vpop.f32.mrb[2].mxu0 }
  0xea   : > { %310 = vmax.xlane.f32.xlu0 %v305_v7  ;;  %v718_v10 = vpop.f32.mrb[3].mxu0 }
 0x177   : > { %v311_v11 = vpop.xlane.xlu0 %310 }
 0x178   : > { %v312_v12 = vsub.f32 %v305_v7, %v311_v11  ;;  %v329_v11 = vld [vmem:[#allocation2 + $0x50] sm:$0xff] }
 0x17a   : > { %v313_v13 = vmul.f32 1.442695, %v312_v12  ;;  %v327_v12 = vld [vmem:[#allocation2 + $0x40] sm:$0xff] }
 0x17c   : > { %774 = vpow2.f32 %v313_v13 }
 0x186   : > { %v775_v14 = vpop.eup %774 }
 0x187   : > { %315 = vadd.xlane.f32.xlu0 %v775_v14 }
 0x214   : > { %v316_v16 = vpop.xlane.xlu0 %315 }
 0x215   : > { %776 = vrcp.f32 %v316_v16  ;;  %v330_v16 = vld [vmem:[#allocation2 + $0x58] sm:$0xff] }
 0x21f   : > { %v777_v17 = vpop.eup %776 }
 0x220   : > { %v318_v18 = vmul.f32 %v777_v17, %v775_v14 }
 0x222   : > { %v335_v19 = vpack.c.bf16 %v318_v18, %v318_v18  ;;  %v510_v20 = vrot.slane %v318_v18, 4 }
 0x224   : > { %v511_v21 = vadd.f32 %v510_v20, %v318_v18  ;;  %336 = vxpose.xlu1.c.b16.start.end [1/1] (short) %v335_v19, 128  ;;  %v328_v19 = vld [vmem:[#allocation2 + $0x48] sm:$0xff] }
 0x226   : > { %v512_v22 = vrot.slane %v511_v21, 2 }
 0x228   : > { %v513_v23 = vadd.f32 %v512_v22, %v511_v21 }
 0x22a   : > { %v514_v25 = vrot.slane %v513_v23, 1 }
 0x22c   : > { %v515_v27 = vadd.f32 %v514_v25, %v513_v23 }
 0x22e   : > { %v516_v28 = vadd.f32 %v515_v27, %v509_v26  ;;  %v333_v26 = vld [vmem:[#allocation2 + $0x70] sm:$0xff]  ;;  %v331_v27 = vld [vmem:[#allocation2 + $0x60] sm:$0xff] }
 0x230   : > { %517 = vst [vmem:[#allocation3] sm:$0x1] %v516_v28 }
 0x237   : > { %v523_v29 = vld [vmem:[#allocation3] sm:$0x1] }
 0x24a   : > { %524 = vxpose.xlu1.b32.start.end [1/1] (short) (narrow) %v523_v29, 16  ;;  %v334_v29 = vld [vmem:[#allocation2 + $0x78] sm:$0xff] }
 0x268   : > { %771 = vset.pattern.permute.xlu1 %v810_v24 }
 0x28a   : > { %v344_v30 = vpop.trf.xlu1 }
 0x28b   : > { %721 = vmatprep.mubr.msk.bf16.mxu0 %vm352_vm3, %v344_v30 }
 0x28e   : > { %v345_v31 = vpop.trf.xlu1 }
 0x28f   : > { %722 = vmatmul.mubr.msk.bf16.vlgmr.msra.gmra.mrb[4].mxu0 %vm352_vm3, %v345_v31 }
 0x292   : > { %v346_v32 = vpop.trf.xlu1 }
 0x293   : > { %725 = vmatprep.mubr.msk.bf16.mxu1 %vm352_vm3, %v346_v32  ;;  %v332_v32 = vld [vmem:[#allocation2 + $0x68] sm:$0xff] }
 0x296   : > { %v347_v33 = vpop.trf.xlu1 }
 0x297   : > { %726 = vmatmul.mubr.msk.bf16.vlgmr.msra.gmra.mrb[0].mxu1 %vm352_vm3, %v347_v33 }
 0x29a   : > { %v348_v34 = vpop.trf.xlu1 }
 0x29b   : > { %729 = vmatprep.mubr.msk.bf16.mxu1 %vm352_vm3, %v348_v34 }
 0x29e   : > { %v349_v35 = vpop.trf.xlu1 }
 0x29f   : > { %730 = vmatmul.mubr.msk.bf16.gmra.mrb[4].mxu1 %vm352_vm3, %v349_v35 }
 0x2a2   : > { %v350_v36 = vpop.trf.xlu1 }
 0x2a3   : > { %733 = vmatprep.mubr.msk.bf16.mxu1 %vm352_vm3, %v350_v36 }
 0x2a6   : > { %v351_v37 = vpop.trf.xlu1 }
 0x2a7   : > { %734 = vmatmul.mubr.msk.bf16.gmra.mrb[8].mxu1 %vm352_vm3, %v351_v37 }
 0x2ca   : > { %v540_v38 = vpop.trf.xlu1 }
 0x2cb   : > { %560 = vperm.xlu0 %770, %v540_v38  }
 0x2ce   : > { %v541_v39 = vpop.trf.xlu1 }
 0x2cf   : > { %565 = vperm.xlu1 %771, %v541_v39  }
 0x34a   : > { %v561_v54 = vpop.permute.xlu0 %560 }
 0x34b   : > { %v568_v63 = vmul.f32 %v561_v54, %v556_v53 }
 0x34e   : > { %v566_v56 = vpop.permute.xlu1 %565 }
 0x34f   : > { %v569_v0 = vmul.f32 %v566_v56, %v557_v55 }
 0x362   : > { %v723_v42 = vpop.f32.mrb[4].mxu0 }
 0x363   : > { %v479_v44 = vadd.f32 %v723_v42, %v321_v40  ;;  %v414_v45 = vpop.f32.mrb[5].mxu0 }
 0x364   : > { %v477_v47 = vadd.f32 %v414_v45, %v319_v41  ;;  %v724_v48 = vpop.f32.mrb[6].mxu0 }
 0x365   : > { %495 = vst.msk [vmem:[#allocation2 + $0x10] sm:$0xff] %vm223_vm1, %v479_v44  ;;  %v480_v49 = vadd.f32 %v724_v48, %v322_v43  ;;  %v417_v50 = vpop.f32.mrb[7].mxu0 }
 0x366   : > { %493 = vst.msk [vmem:[#allocation2] sm:$0xff] %vm223_vm1, %v477_v47  ;;  %v478_v51 = vadd.f32 %v417_v50, %v320_v46 }
 0x367   : > { %496 = vst.msk [vmem:[#allocation2 + $0x18] sm:$0xff] %vm223_vm1, %v480_v49 }
 0x368   : > { %494 = vst.msk [vmem:[#allocation2 + $0x8] sm:$0xff] %vm223_vm1, %v478_v51 }
 0x36a   : > { %v727_v58 = vpop.f32.mrb[0].mxu1 }
 0x36b   : > { %v483_v60 = vadd.f32 %v727_v58, %v325_v52  ;;  %v430_v61 = vpop.f32.mrb[1].mxu1 }
 0x36c   : > { %v481_v1 = vadd.f32 %v430_v61, %v323_v57  ;;  %v728_v2 = vpop.f32.mrb[2].mxu1 }
 0x36d   : > { %v521_v3 = vld [vmem:[#allocation2] sm:$0xff]  ;;  %499 = vst.msk [vmem:[#allocation2 + $0x30] sm:$0xff] %vm223_vm1, %v483_v60  ;;  %v484_v4 = vadd.f32 %v728_v2, %v326_v59  ;;  %v433_v5 = vpop.f32.mrb[3].mxu1 }
 0x36e   : > { %v911_v6 = vsub.f32 %v521_v3, %v568_v63  ;;  %497 = vst.msk [vmem:[#allocation2 + $0x20] sm:$0xff] %vm223_vm1, %v481_v1  ;;  %v482_v7 = vadd.f32 %v433_v5, %v324_v62 }
 0x36f   : > { %v522_v8 = vld [vmem:[#allocation2 + $0x8] sm:$0xff]  ;;  %500 = vst.msk [vmem:[#allocation2 + $0x38] sm:$0xff] %vm223_vm1, %v484_v4 }
 0x370   : > { %v915_v9 = vsub.f32 %v522_v8, %v569_v0  ;;  %v572_v10 = vmul.f32 %v911_v6, %v911_v6  ;;  %498 = vst.msk [vmem:[#allocation2 + $0x28] sm:$0xff] %vm223_vm1, %v482_v7 }
 0x372   : > { %v574_v13 = vsel %vm223_vm1, %v572_v10, 0.0  ;;  %v573_v14 = vmul.f32 %v915_v9, %v915_v9  ;;  %v731_v15 = vpop.f32.mrb[4].mxu1 }
 0x373   : > { %575 = vadd.xlane.f32.xlu0 %v574_v13  ;;  %v487_v17 = vadd.f32 %v731_v15, %v329_v11  ;;  %v446_v18 = vpop.f32.mrb[5].mxu1 }
 0x374   : > { %v577_v20 = vsel %vm223_vm1, %v573_v14, 0.0  ;;  %v485_v21 = vadd.f32 %v446_v18, %v327_v12  ;;  %v732_v22 = vpop.f32.mrb[6].mxu1 }
 0x375   : > { %578 = vadd.xlane.f32.xlu1 %v577_v20  ;;  %503 = vst.msk [vmem:[#allocation2 + $0x50] sm:$0xff] %vm223_vm1, %v487_v17  ;;  %v488_v23 = vadd.f32 %v732_v22, %v330_v16  ;;  %v449_v24 = vpop.f32.mrb[7].mxu1 }
 0x376   : > { %501 = vst.msk [vmem:[#allocation2 + $0x40] sm:$0xff] %vm223_vm1, %v485_v21  ;;  %v486_v25 = vadd.f32 %v449_v24, %v328_v19 }
 0x377   : > { %504 = vst.msk [vmem:[#allocation2 + $0x58] sm:$0xff] %vm223_vm1, %v488_v23 }
 0x378   : > { %502 = vst.msk [vmem:[#allocation2 + $0x48] sm:$0xff] %vm223_vm1, %v486_v25 }
 0x37a   : > { %v735_v28 = vpop.f32.mrb[8].mxu1 }
 0x37b   : > { %v491_v30 = vadd.f32 %v735_v28, %v333_v26  ;;  %v462_v31 = vpop.f32.mrb[9].mxu1 }
 0x37c   : > { %v489_v33 = vadd.f32 %v462_v31, %v331_v27  ;;  %v736_v34 = vpop.f32.mrb[10].mxu1 }
 0x37d   : > { %507 = vst.msk [vmem:[#allocation2 + $0x70] sm:$0xff] %vm223_vm1, %v491_v30  ;;  %v492_v35 = vadd.f32 %v736_v34, %v334_v29  ;;  %v465_v36 = vpop.f32.mrb[11].mxu1 }
 0x37e   : > { %505 = vst.msk [vmem:[#allocation2 + $0x60] sm:$0xff] %vm223_vm1, %v489_v33  ;;  %v490_v37 = vadd.f32 %v465_v36, %v332_v32 }
 0x37f   : > { %508 = vst.msk [vmem:[#allocation2 + $0x78] sm:$0xff] %vm223_vm1, %v492_v35 }
 0x380   : > { %506 = vst.msk [vmem:[#allocation2 + $0x68] sm:$0xff] %vm223_vm1, %v490_v37 }
 0x400   : > { %v576_v38 = vpop.xlane.xlu0 %575 }
 0x401   : > { %v586_v39 = vmul.f32 1e+24, %v576_v38  ;;  %v580_v54 = vmax.f32 %v576_v38, 1e-24 }
 0x402   : > { %v579_v40 = vpop.xlane.xlu1 %578 }
 0x403   : > { %v588_v41 = vmin.f32 %v586_v39, 1.0  ;;  %v587_v42 = vmul.f32 1e+24, %v579_v40  ;;  %v581_v55 = vmax.f32 %v579_v40, 1e-24  ;;  %778 = vrsqrt.f32 %v580_v54 }
 0x405   : > { %v589_v43 = vmin.f32 %v587_v42, 1.0  ;;  %v591_v44 = vsel %vm590_vm4, %v588_v41, 0.0  ;;  %780 = vrsqrt.f32 %v581_v55 }
 0x407   : > { %v592_v45 = vsel %vm590_vm4, %v589_v43, 0.0 }
 0x408   : > { %v593_v46 = vadd.f32 %v592_v45, %v591_v44 }
 0x40a   : > { %594 = vadd.xlane.f32.xlu0 %v593_v46 }
 0x40d   : > { %v779_v58 = vpop.eup %778 }
 0x40e   : > { %v584_v60 = vmul.f32 %v779_v58, %v911_v6 }
 0x40f   : > { %v781_v59 = vpop.eup %780 }
 0x410   : > { %v585_v61 = vmul.f32 %v781_v59, %v915_v9 }
 0x497   : > { %v595_v47 = vpop.xlane.xlu0 %594 }
 0x498   : > { %v596_v48 = vrot.slane %v595_v47, 4 }
 0x49a   : > { %v597_v49 = vadd.f32 %v596_v48, %v595_v47 }
 0x49c   : > { %v598_v50 = vrot.slane %v597_v49, 2 }
 0x49e   : > { %v599_v51 = vadd.f32 %v598_v50, %v597_v49 }
 0x4a0   : > { %v600_v52 = vrot.slane %v599_v51, 1 }
 0x4a2   : > { %v601_v53 = vadd.f32 %v600_v52, %v599_v51 }
 0x4a4   : > { %741 = vpush %v601_v53 }
 0x4d5   : > { %s742_s7 = spop %741 }
 0x4d6   : > { %v603_v56 = vstv %s742_s7 }
 0x4d7   : > { %v604_v57 = vmax.f32 %v603_v56, 1e-24 }
 0x4d9   : > { %782 = vrsqrt.f32 %v604_v57 }
 0x4e3   : > { %v783_v62 = vpop.eup %782 }
 0x4e4   : > { %v606_v63 = vmul.f32 %v783_v62, %v584_v60  ;;  %v607_v0 = vmul.f32 %v783_v62, %v585_v61 }
 0x4e6   : > { %608 = vst.msk [vmem:[%s217_s11] sm:$0xff] %vm223_vm1, %v606_v63  ;;  %609 = vst.msk [vmem:[%s217_s11 + $0x8] sm:$0xff] %vm223_vm1, %v607_v0 }
 0x4e7 PF: > { %s14_s17 = sadd.s32 1, %s806_s17   ;;  %s954_s15 = smov %s802_s16 }
 0x4e8   : > { %p11_p5 = scmp.ge.s32.totalorder %s14_s17, 4   ;;  %s955_s16 = smov %s957_s18 }
 0x4ea   :  { %13 = sbr.rel (!%p11_p5) target bundleno = 2 (0x2), region = 74 }

</bundles_post_ra>
